<compile_context>
chip_gen: v6e
topology: v6e:2x2x1
jax: 0.10.0
libtpu: 0.0.40
codegen_flags: <defaults>
</compile_context>

<pallas_src>
import functools

import jax
import jax.numpy as jnp
from jax.experimental import pallas as pl
from jax.experimental.pallas import tpu as pltpu


_VMEM_LIMIT_BYTES = 32 * 1024 * 1024     # <= physical VMEM on v5e/v6e/v7x
_DEFAULT_BLOCK_BYTES = 2 * 1024 * 1024   # per-block budget: 4x (dbl-buffered in+out) fits everywhere


def _round_up(v, m):
    return (v + m - 1) // m * m


def _pack_params(w1, b1, w2, b2, C, C_r):
    """Pack (w1, w2^T, b1, b2) into one (2*C_r + 2, C) f32 block (single DMA)."""
    w1f = w1.astype(jnp.float32)                                    # rows [0, C_r)
    w2tf = w2.T.astype(jnp.float32)                                 # rows [C_r, 2*C_r)
    b1_row = jnp.zeros((1, C), jnp.float32).at[0, :C_r].set(b1.astype(jnp.float32))
    b2_row = b2.astype(jnp.float32).reshape(1, C)
    return jnp.concatenate([w1f, w2tf, b1_row, b2_row], axis=0)


def _squeeze_excite(pooled, p, C_r):
    """pooled: (B, C) f32, p: packed params.  Tiny -> VPU/XLU only (no MXU)."""
    w1_k = p[0:C_r, :]                                  # (C_r, C)
    w2t_k = p[C_r:2 * C_r, :]                           # (C_r, C) == w2^T
    b1_k = p[2 * C_r:2 * C_r + 1, 0:C_r]                # (1, C_r)
    b2_k = p[2 * C_r + 1:2 * C_r + 2, :]                # (1, C)
    h = jnp.sum(pooled[:, None, :] * w1_k[None, :, :], axis=-1) + b1_k   # (B, C_r)
    h = jnp.maximum(h, 0.0)
    y = jnp.sum(h[:, :, None] * w2t_k[None, :, :], axis=1) + b2_k        # (B, C)
    return jax.nn.sigmoid(y)


def _fused_kernel(x_ref, p_ref, o_ref, *, C_r, inv_hw):
    # Pool in f32 (first read of the tile).  Spatial zero-padding (if any)
    # contributes 0 to the sum; inv_hw uses the true H*W.
    pooled = jnp.sum(x_ref[...].astype(jnp.float32), axis=-1) * inv_hw    # (NB, C)
    y = _squeeze_excite(pooled, p_ref[...], C_r)                          # (NB, C) f32
    scale = y.astype(o_ref.dtype)[:, :, None]                             # (NB, C, 1)
    # Second, independent read of the tile for the scale so the multi-MB value
    # isn't live across the squeeze/excite (regalloc / spill pressure).
    o_ref[...] = (x_ref[...] * scale).astype(o_ref.dtype)


def _pool_kernel(x_ref, p_ref, y_ref, *, C_r, inv_hw):
    # Grid axis 0 = spatial tiles ("arbitrary"); y_ref is the resident f32
    # accumulator and, on the last step, the sigmoid attention weights.
    h_idx = pl.program_id(0)

    @pl.when(h_idx == 0)
    def _():
        y_ref[...] = jnp.zeros_like(y_ref)

    y_ref[...] += jnp.sum(x_ref[...].astype(jnp.float32), axis=-1)

    @pl.when(h_idx == pl.num_programs(0) - 1)
    def _():
        pooled = y_ref[...] * inv_hw
        y_ref[...] = _squeeze_excite(pooled, p_ref[...], C_r)


def _scale_kernel(x_ref, y_ref, o_ref):
    n = pl.program_id(0)
    scale = y_ref[pl.ds(n, 1), :].astype(o_ref.dtype)                    # (1, C)
    o_ref[...] = (x_ref[...] * scale[:, :, None]).astype(o_ref.dtype)


@functools.partial(jax.jit, static_argnames=("max_block_bytes",))
def ca_layer(x, w1, b1, w2, b2, *, max_block_bytes=_DEFAULT_BLOCK_BYTES):
    """Channel attention: x * sigmoid(conv1x1(relu(conv1x1(avgpool(x))))).

    x:  (N, C, H, W)
    w1: (C_r, C), b1: (C_r,)   -- squeeze conv
    w2: (C, C_r), b2: (C,)     -- excite conv
    """
    N, C, H, W = x.shape
    HW = H * W
    C_r = w1.shape[0]
    P_ROWS = 2 * C_r + 2
    itemsize = x.dtype.itemsize
    inv_hw = 1.0 / float(HW)

    params = _pack_params(w1, b1, w2, b2, C, C_r)

    # Decide between the fused single-pass kernel (whole spatial extent in one
    # block) and the spatially-tiled two-pass form.
    per_sample_bytes = C * _round_up(HW, 128) * itemsize
    fused = per_sample_bytes <= max_block_bytes

    if fused:
        hw_t = _round_up(HW, 128)
    else:
        hw_t = max(128, (max_block_bytes // (C * itemsize)) // 128 * 128)
    hw_pad = _round_up(HW, hw_t)          # lane-dense (128-multiple) stores

    x_flat = x.reshape(N, C, HW)
    if hw_pad != HW:
        x_flat = jnp.pad(x_flat, ((0, 0), (0, 0), (0, hw_pad - HW)))

    if fused:
        # Batch blocking: biggest divisor of N within the block budget, but
        # keep >= 2 grid steps whenever N >= 2 (pipelining + both v7x TCs).
        nb_cap = max(1, max_block_bytes // (C * hw_pad * itemsize))
        NB = 1
        for d in range(1, N + 1):
            if N % d == 0 and d <= nb_cap and (N // d) >= min(N, 2):
                NB = d
        steps = N // NB

        kernel = functools.partial(_fused_kernel, C_r=C_r, inv_hw=inv_hw)
        out_flat = pl.pallas_call(
            kernel,
            out_shape=jax.ShapeDtypeStruct((N, C, hw_pad), x.dtype),
            grid_spec=pltpu.PrefetchScalarGridSpec(
                num_scalar_prefetch=0,
                grid=(steps,),
                in_specs=[
                    pl.BlockSpec((NB, C, hw_pad), lambda n: (n, 0, 0)),
                    pl.BlockSpec((P_ROWS, C), lambda n: (0, 0)),
                ],
                out_specs=pl.BlockSpec((NB, C, hw_pad), lambda n: (n, 0, 0)),
            ),
            compiler_params=pltpu.CompilerParams(
                dimension_semantics=("parallel",),
                vmem_limit_bytes=_VMEM_LIMIT_BYTES),
        )(x_flat, params)
    else:
        hw_steps = hw_pad // hw_t

        # Pass 1: tiled global-average-pool (f32 accumulation) + attention
        # weights y = sigmoid(excite(relu(squeeze(pool)))).
        # TODO(synk): block the batch axis here too if N*C*hw_t ever exceeds
        # the per-block VMEM budget for very large batches.
        pool_kernel = functools.partial(_pool_kernel, C_r=C_r, inv_hw=inv_hw)
        y = pl.pallas_call(
            pool_kernel,
            out_shape=jax.ShapeDtypeStruct((N, C), jnp.float32),
            grid_spec=pltpu.PrefetchScalarGridSpec(
                num_scalar_prefetch=0,
                grid=(hw_steps,),
                in_specs=[
                    pl.BlockSpec((N, C, hw_t), lambda h: (0, 0, h)),
                    pl.BlockSpec((P_ROWS, C), lambda h: (0, 0)),
                ],
                out_specs=pl.BlockSpec((N, C), lambda h: (0, 0)),
            ),
            compiler_params=pltpu.CompilerParams(
                dimension_semantics=("arbitrary",),
                vmem_limit_bytes=_VMEM_LIMIT_BYTES),
        )(x_flat, params)

        # Pass 2: per-channel scale streamed over (batch, spatial tiles).
        out_flat = pl.pallas_call(
            _scale_kernel,
            out_shape=jax.ShapeDtypeStruct((N, C, hw_pad), x.dtype),
            grid_spec=pltpu.PrefetchScalarGridSpec(
                num_scalar_prefetch=0,
                grid=(N, hw_steps),
                in_specs=[
                    pl.BlockSpec((1, C, hw_t), lambda n, h: (n, 0, h)),
                    pl.BlockSpec((N, C), lambda n, h: (0, 0)),
                ],
                out_specs=pl.BlockSpec((1, C, hw_t), lambda n, h: (n, 0, h)),
            ),
            compiler_params=pltpu.CompilerParams(
                dimension_semantics=("parallel", "parallel"),
                vmem_limit_bytes=_VMEM_LIMIT_BYTES),
        )(x_flat, y)

    if hw_pad != HW:
        out_flat = out_flat[:, :, :HW]
    return out_flat.reshape(N, C, H, W)


def _reference(x, w1, b1, w2, b2):
    # Pure-JAX reference matching the PyTorch forward.
    pooled = jnp.mean(x, axis=(2, 3))                       # (N, C)
    h = jnp.maximum(pooled @ w1.T + b1, 0.0)                # (N, C_r)
    y = jax.nn.sigmoid(h @ w2.T + b2)                       # (N, C)
    return x * y[:, :, None, None]


if __name__ == "__main__":
    # Shapes consistent with CALayer(channel=32, reduction=16)
    N, C, H, W = 2, 32, 16, 16
    reduction = 16
    C_r = C // reduction

    key = jax.random.PRNGKey(0)
    kx, k1, kb1, k2, kb2, kx2 = jax.random.split(key, 6)

    x = jax.random.normal(kx, (N, C, H, W), dtype=jnp.float32)

    # Deterministic synthetic Conv2d(1x1) parameters (kaiming-uniform-ish scale)
    bound1 = 1.0 / (C ** 0.5)
    w1 = jax.random.uniform(k1, (C_r, C), jnp.float32, -bound1, bound1)
    b1 = jax.random.uniform(kb1, (C_r,), jnp.float32, -bound1, bound1)
    bound2 = 1.0 / (C_r ** 0.5)
    w2 = jax.random.uniform(k2, (C, C_r), jnp.float32, -bound2, bound2)
    b2 = jax.random.uniform(kb2, (C,), jnp.float32, -bound2, bound2)

    ref = _reference(x, w1, b1, w2, b2)

    # 1) Default path: fused kernel, grid over batch.
    out = jax.block_until_ready(ca_layer(x, w1, b1, w2, b2))
    assert out.shape == (N, C, H, W)
    assert jnp.allclose(out, ref, atol=1e-5, rtol=1e-5), "fused path mismatch"

    # 2) Force the spatially-tiled two-pass path (used for large H*W).
    out_tiled = jax.block_until_ready(
        ca_layer(x, w1, b1, w2, b2, max_block_bytes=16 * 1024))
    assert jnp.allclose(out_tiled, ref, atol=1e-5, rtol=1e-5), "tiled path mismatch"

    # 3) Non-128-multiple spatial size -> lane-padding path.
    x_odd = jax.random.normal(kx2, (N, C, 9, 9), dtype=jnp.float32)
    ref_odd = _reference(x_odd, w1, b1, w2, b2)
    out_odd = jax.block_until_ready(ca_layer(x_odd, w1, b1, w2, b2))
    assert out_odd.shape == (N, C, 9, 9)
    assert jnp.allclose(out_odd, ref_odd, atol=1e-5, rtol=1e-5), "padded path mismatch"

    print("KERNEL_OK")
</pallas_src>

<mosaic_0001>
module attributes {stable_mosaic.version = 11 : i64} {
  func.func @_fused_kernel(%arg0: i32, %arg1: memref<1x32x256xf32, #tpu.memory_space<vmem>>, %arg2: memref<6x32xf32, #tpu.memory_space<vmem>>, %arg3: memref<1x32x256xf32, #tpu.memory_space<vmem>>) attributes {dimension_semantics = [#tpu.dimension_semantics<parallel>], iteration_bounds = array<i64: 2>, scalar_prefetch = 0 : i64, scratch_operands = 0 : i64, tpu.core_type = #tpu.core_type<tc>, window_params = [{transform_indices = @transform_0, window_bounds = array<i64: 1, 32, 256>}, {pipeline_mode = #tpu.pipeline_mode<synchronous>, transform_indices = @transform_1, window_bounds = array<i64: 6, 32>}, {transform_indices = @transform_2, window_bounds = array<i64: 1, 32, 256>}]} {
    %c0 = arith.constant 0 : index
    %c0_0 = arith.constant 0 : index
    %c0_1 = arith.constant 0 : index
    %0 = vector.load %arg1[%c0, %c0_0, %c0_1] : memref<1x32x256xf32, #tpu.memory_space<vmem>>, vector<1x32x256xf32>
    %cst = arith.constant dense<0.000000e+00> : vector<1x32xf32>
    %1 = vector.multi_reduction <add>, %0, %cst [2] : vector<1x32x256xf32> to vector<1x32xf32>
    %cst_2 = arith.constant 3.906250e-03 : f32
    %2 = vector.broadcast %cst_2 : f32 to vector<1x32xf32>
    %3 = arith.mulf %1, %2 : vector<1x32xf32>
    %c0_3 = arith.constant 0 : index
    %c0_4 = arith.constant 0 : index
    %4 = vector.load %arg2[%c0_3, %c0_4] : memref<6x32xf32, #tpu.memory_space<vmem>>, vector<6x32xf32>
    %5 = vector.extract_strided_slice %4 {offsets = [0, 0], sizes = [2, 32], strides = [1, 1]} : vector<6x32xf32> to vector<2x32xf32>
    %6 = vector.extract_strided_slice %4 {offsets = [2, 0], sizes = [2, 32], strides = [1, 1]} : vector<6x32xf32> to vector<2x32xf32>
    %7 = vector.extract_strided_slice %4 {offsets = [4, 0], sizes = [1, 2], strides = [1, 1]} : vector<6x32xf32> to vector<1x2xf32>
    %8 = vector.extract_strided_slice %4 {offsets = [5, 0], sizes = [1, 32], strides = [1, 1]} : vector<6x32xf32> to vector<1x32xf32>
    %9 = vector.shape_cast %3 : vector<1x32xf32> to vector<1x1x32xf32>
    %10 = vector.shape_cast %5 : vector<2x32xf32> to vector<1x2x32xf32>
    %11 = vector.broadcast %9 : vector<1x1x32xf32> to vector<1x2x32xf32>
    %12 = arith.mulf %11, %10 : vector<1x2x32xf32>
    %cst_5 = arith.constant dense<0.000000e+00> : vector<1x2xf32>
    %13 = vector.multi_reduction <add>, %12, %cst_5 [2] : vector<1x2x32xf32> to vector<1x2xf32>
    %14 = arith.addf %13, %7 : vector<1x2xf32>
    %cst_6 = arith.constant 0.000000e+00 : f32
    %15 = vector.broadcast %cst_6 : f32 to vector<1x2xf32>
    %16 = arith.maximumf %14, %15 : vector<1x2xf32>
    %17 = vector.shape_cast %16 : vector<1x2xf32> to vector<1x2x1xf32>
    %18 = vector.shape_cast %6 : vector<2x32xf32> to vector<1x2x32xf32>
    %19 = vector.broadcast %17 : vector<1x2x1xf32> to vector<1x2x32xf32>
    %20 = arith.mulf %19, %18 : vector<1x2x32xf32>
    %cst_7 = arith.constant dense<0.000000e+00> : vector<1x32xf32>
    %21 = vector.multi_reduction <add>, %20, %cst_7 [1] : vector<1x2x32xf32> to vector<1x32xf32>
    %22 = arith.addf %21, %8 : vector<1x32xf32>
    %23 = arith.negf %22 : vector<1x32xf32>
    %24 = math.exp %23 : vector<1x32xf32>
    %cst_8 = arith.constant 1.000000e+00 : f32
    %25 = vector.broadcast %cst_8 : f32 to vector<1x32xf32>
    %26 = arith.addf %25, %24 : vector<1x32xf32>
    %27 = arith.divf %25, %26 : vector<1x32xf32>
    %28 = vector.shape_cast %27 : vector<1x32xf32> to vector<1x32x1xf32>
    %c0_9 = arith.constant 0 : index
    %c0_10 = arith.constant 0 : index
    %c0_11 = arith.constant 0 : index
    %29 = vector.load %arg1[%c0_9, %c0_10, %c0_11] : memref<1x32x256xf32, #tpu.memory_space<vmem>>, vector<1x32x256xf32>
    %30 = vector.broadcast %28 : vector<1x32x1xf32> to vector<1x32x256xf32>
    %31 = arith.mulf %29, %30 : vector<1x32x256xf32>
    %c0_12 = arith.constant 0 : index
    %c0_13 = arith.constant 0 : index
    %c0_14 = arith.constant 0 : index
    %32 = vector.load %arg3[%c0_12, %c0_13, %c0_14] : memref<1x32x256xf32, #tpu.memory_space<vmem>>, vector<1x32x256xf32>
    tpu.vector_store %arg3[%c0_12, %c0_13, %c0_14], %31 {strides = array<i32>} : memref<1x32x256xf32, #tpu.memory_space<vmem>>, vector<1x32x256xf32>,
    return
  }
  func.func @transform_0(%arg0: i32) -> (i32, i32, i32) {
    %c0_i32 = arith.constant 0 : i32
    %c0_i32_0 = arith.constant 0 : i32
    %c0_i32_1 = arith.constant 0 : i32
    return %arg0, %c0_i32, %c0_i32_0 : i32, i32, i32
  }
  func.func @transform_1(%arg0: i32) -> (i32, i32) {
    %c0_i32 = arith.constant 0 : i32
    %c0_i32_0 = arith.constant 0 : i32
    %c0_i32_1 = arith.constant 0 : i32
    return %c0_i32, %c0_i32_0 : i32, i32
  }
  func.func @transform_2(%arg0: i32) -> (i32, i32, i32) {
    %c0_i32 = arith.constant 0 : i32
    %c0_i32_0 = arith.constant 0 : i32
    %c0_i32_1 = arith.constant 0 : i32
    return %arg0, %c0_i32, %c0_i32_0 : i32, i32, i32
  }
}

</mosaic_0001>

<bundles_post_ra>
// kernel: ca_layer.1
= control target key start
LH: loop header
LB: loop body
LE: loop exit
PB: predicated region body
PF: predicated region fallthrough
CT: control target
= control target key end

     0   :  { %s484_s9 = smov 0   ;;  %s560_s0 = inlined_call_operand.vmem [shape: f32[2,32,256], index: 0, kind: input, shape index: {}]   ;;  %s561_s1 = inlined_call_operand.vmem [shape: f32[6,32], index: 1, kind: input, shape index: {}]   ;;  %s562_s2 = inlined_call_operand.vmem [shape: f32[2,32,256], index: 2, kind: output, shape index: {}]  }
   0x1 LB: > { %s431_s10 = sadd.s32 4294967295, %s466_s9   ;;  %p435_p0 = scmp.ge.s32.totalorder %s466_s9, 1  ;;  %s466_s9 = sphi %s484_s9, %s12_s9  }
   0x2   : > { %p112_p1 = scmp.lt.s32.totalorder %s466_s9, 3 }
   0x4   : > { %p113_p2 = pnand %p435_p0, %p112_p1 }
   0x5   : > { %p134_p3 = scmp.lt.s32.totalorder (!%p113_p2), %s431_s10, 1 }
   0x6   : > { %116 = sbr.rel (%p113_p2) target bundleno = 757 (0x2f5), region = 28 }
   0xb   : > { %s564_s10 = smov (!%p134_p3, %s431_s10), 1  ;;  %v170_v12 = vlaneseq  ;;  %v530_v15 = vld [vmem:[%s561_s1] sm:$0x3f]  ;;  %v468_v18 = vmov 0   ;;  %vm267_vm0 = vcmask 130112   ;;  %vm274_vm1 = vcmask 195712  }
   0xc   : > { %s443_s11 = sshll.u32 %s564_s10, 6  ;;  %455 = vset.pattern.permute.xlu1 %v468_v18  ;;  %454 = vset.pattern.permute.xlu0 %v468_v18  ;;  %vm281_vm2 = vcmask 261312   ;;  %vm302_vm3 = vcmask 1041409   ;;  %vm305_vm4 = vcmask 254976  }
   0xd   : > { %s138_s14 = scalar_lea.vmem %s560_s0, %s443_s11  ;;  %v524_v13 = vshrl.u32 %v170_v12, 7  ;;  %v257_v47 = vand.u32 127, %v170_v12  ;;  %s143_s19 = scalar_lea.vmem %s562_s2, %s443_s11 }
   0xe   : > { %v500_v0 = vld [vmem:[%s138_s14 + $0x20] sm:$0xff]  ;;  %v502_v1 = vld [vmem:[%s138_s14 + $0x28] sm:$0xff]  ;;  %v510_v5 = vld [vmem:[%s138_s14 + $0x30] sm:$0xff] }
   0xf   : > { %v504_v2 = vld [vmem:[%s138_s14] sm:$0xff]  ;;  %v158_v3 = vadd.f32 %v502_v1, %v500_v0  ;;  %v508_v4 = vld [vmem:[%s138_s14 + $0x8] sm:$0xff]  ;;  %v512_v6 = vld [vmem:[%s138_s14 + $0x38] sm:$0xff]  ;;  %v172_v14 = vsub.s32 0, %v524_v13  ;;  %v191_v17 = vsub.s32 1, %v524_v13  ;;  %v311_v44 = vsub.s32 4, %v524_v13 }
  0x10   : > { %v152_v7 = vadd.f32 %v508_v4, %v504_v2  ;;  %v516_v8 = vld [vmem:[%s138_s14 + $0x10] sm:$0xff]  ;;  %v518_v9 = vld [vmem:[%s138_s14 + $0x18] sm:$0xff]  ;;  %v161_v10 = vadd.f32 %v512_v6, %v510_v5  ;;  %v262_v50 = vadd.s32 4294967288, %v257_v47  ;;  %v269_v51 = vadd.s32 4294967280, %v257_v47 }
  0x11   : > { %159 = vadd.xlane.f32.xlu1 %v158_v3  ;;  %v155_v11 = vadd.f32 %v518_v9, %v516_v8  ;;  %v173_v16 = vrot.slane %v530_v15, %v172_v14  ;;  %v192_v19 = vrot.slane %v530_v15, %v191_v17  ;;  %v312_v45 = vrot.slane %v530_v15, %v311_v44 }
  0x12   : > { %153 = vadd.xlane.f32.xlu0 %v152_v7  ;;  %v276_v52 = vadd.s32 4294967272, %v257_v47  ;;  %v265_v55 = vsub.s32 %v262_v50, %v524_v13  ;;  %v260_v56 = vsub.s32 %v257_v47, %v524_v13  ;;  %v272_v57 = vsub.s32 %v269_v51, %v524_v13 }
  0x14   : > { %v279_v58 = vsub.s32 %v276_v52, %v524_v13 }
  0x15   : > { %162 = vadd.xlane.f32.xlu1 %v161_v10 }
  0x16   : > { %156 = vadd.xlane.f32.xlu0 %v155_v11 }
  0x26   : > { %179 = vbcast.lane.b32.xlu1 %v173_v16, 264 }
  0x2a   : > { %194 = vbcast.lane.b32.xlu1 %v192_v19, 256 }
  0x2c   : > { %175 = vbcast.lane.b32.xlu0 %v173_v16, 256 }
  0x2e   : > { %198 = vbcast.lane.b32.xlu1 %v192_v19, 264 }
  0x30   : > { %183 = vbcast.lane.b32.xlu0 %v173_v16, 272 }
  0x32   : > { %202 = vbcast.lane.b32.xlu1 %v192_v19, 272 }
  0x34   : > { %187 = vbcast.lane.b32.xlu0 %v173_v16, 280 }
  0x36   : > { %206 = vbcast.lane.b32.xlu1 %v192_v19, 280 }
  0x9a   : > { %v160_v20 = vpop.xlane.xlu1 %159 }
  0x9b   : > { %v154_v21 = vpop.xlane.xlu0 %153  ;;  %v166_v33 = vmul.f32 0.00390625, %v160_v20 }
  0x9c   : > { %v164_v25 = vmul.f32 0.00390625, %v154_v21 }
  0x9e   : > { %v163_v22 = vpop.xlane.xlu1 %162 }
  0x9f   : > { %v157_v23 = vpop.xlane.xlu0 %156  ;;  %v167_v38 = vmul.f32 0.00390625, %v163_v22 }
  0xa0   : > { %v165_v24 = vmul.f32 0.00390625, %v157_v23 }
  0xa2   : > { %v180_v26 = vpop.permute.xlu1 %179 }
  0xa3   : > { %v217_v27 = vmul.f32 %v180_v26, %v165_v24  ;;  %v176_v28 = vpop.permute.xlu0 %175 }
  0xa4   : > { %v216_v29 = vmul.f32 %v176_v28, %v164_v25  ;;  %v324_v28 = vrot.slane %v530_v15, 2 }
  0xa5   : > { %236 = vperm.xlu1 %455, %v217_v27  }
  0xa6   : > { %233 = vperm.xlu0 %454, %v216_v29   ;;  %v195_v30 = vpop.permute.xlu1 %194 }
  0xa7   : > { %v220_v31 = vmul.f32 %v195_v30, %v164_v25  ;;  %v184_v32 = vpop.permute.xlu0 %183 }
  0xa8   : > { %v218_v35 = vmul.f32 %v184_v32, %v166_v33 }
  0xa9   : > { %245 = vperm.xlu1 %455, %v220_v31  }
  0xaa   : > { %v199_v34 = vpop.permute.xlu1 %198 }
  0xab   : > { %v221_v36 = vmul.f32 %v199_v34, %v165_v24  ;;  %v188_v37 = vpop.permute.xlu0 %187 }
  0xac   : > { %v219_v40 = vmul.f32 %v188_v37, %v167_v38 }
  0xad   : > { %248 = vperm.xlu0 %454, %v221_v36   ;;  %239 = vperm.xlu1 %455, %v218_v35  }
  0xae   : > { %v203_v39 = vpop.permute.xlu1 %202 }
  0xaf   : > { %v222_v41 = vmul.f32 %v203_v39, %v166_v33 }
  0xb1   : > { %251 = vperm.xlu0 %454, %v222_v41   ;;  %242 = vperm.xlu1 %455, %v219_v40  }
  0xb2   : > { %v207_v42 = vpop.permute.xlu1 %206 }
  0xb3   : > { %v223_v43 = vmul.f32 %v207_v42, %v167_v38  ;;  %v343_v42 = vsub.s32 5, %v524_v13 }
  0xb5   : > { %254 = vperm.xlu0 %454, %v223_v43  }
  0xb9   : > { %314 = vbcast.lane.b32.xlu0 %v312_v45, 256 }
 0x120   : > { %v237_v46 = vpop.permute.xlu1 %236 }
 0x121   : > { %v234_v48 = vpop.permute.xlu0 %233  ;;  %v266_v61 = vrot.slane %v237_v46, %v265_v55 }
 0x122   : > { %v261_v62 = vrot.slane %v234_v48, %v260_v56 }
 0x124   : > { %v246_v49 = vpop.permute.xlu1 %245  ;;  %v268_v14 = vsel %vm267_vm0, %v266_v61, %v261_v62 }
 0x125   : > { %v286_v10 = vrot.slane %v246_v49, %v260_v56 }
 0x128   : > { %v240_v53 = vpop.permute.xlu1 %239  ;;  %v249_v54 = vpop.permute.xlu0 %248 }
 0x129   : > { %v290_v63 = vrot.slane %v249_v54, %v265_v55  ;;  %v273_v3 = vrot.slane %v240_v53, %v272_v57 }
 0x12b   : > { %v291_v16 = vsel %vm267_vm0, %v290_v63, %v286_v10  ;;  %v275_v18 = vsel %vm274_vm1, %v273_v3, %v268_v14 }
 0x12c   : > { %v243_v59 = vpop.permute.xlu1 %242  ;;  %v252_v60 = vpop.permute.xlu0 %251 }
 0x12d   : > { %v295_v7 = vrot.slane %v252_v60, %v272_v57  ;;  %v280_v11 = vrot.slane %v243_v59, %v279_v58 }
 0x12f   : > { %v296_v19 = vsel %vm274_vm1, %v295_v7, %v291_v16  ;;  %v282_v20 = vsel %vm281_vm2, %v280_v11, %v275_v18 }
 0x130   : > { %v255_v12 = vpop.permute.xlu0 %254 }
 0x131   : > { %v300_v17 = vrot.slane %v255_v12, %v279_v58 }
 0x133   : > { %v301_v21 = vsel %vm281_vm2, %v300_v17, %v296_v19 }
 0x134   : > { %v303_v22 = vsel %vm302_vm3, %v301_v21, %v282_v20  ;;  %v315_v24 = vpop.permute.xlu0 %314 }
 0x135   : > { %v306_v23 = vsel %vm305_vm4, %v303_v22, 0.0 }
 0x136   : > { %307 = vadd.xlane.f32.xlu1 %v306_v23 }
 0x1bf   : > { %v308_v25 = vpop.xlane.xlu1 %307 }
 0x1c0   : > { %v317_v26 = vadd.f32 %v315_v24, %v308_v25 }
 0x1c2   : > { %v318_v27 = vmax.f32 %v317_v26, 0.0 }
 0x1c4   : > { %321 = vperm.xlu0 %454, %v318_v27  }
 0x23f   : > { %v322_v29 = vpop.permute.xlu0 %321 }
 0x240   : > { %v326_v30 = vmul.f32 %v324_v28, %v322_v29 }
 0x242   : > { %v327_v31 = vsel %vm305_vm4, %v326_v30, 0.0 }
 0x243   : > { %v328_v32 = vrot.slane %v327_v31, 4 }
 0x245   : > { %v329_v33 = vadd.f32 %v328_v32, %v327_v31 }
 0x247   : > { %v330_v34 = vrot.slane %v329_v33, 2 }
 0x249   : > { %v331_v35 = vadd.f32 %v330_v34, %v329_v33 }
 0x24b   : > { %v332_v36 = vrot.slane %v331_v35, 1 }
 0x24d   : > { %v333_v37 = vadd.f32 %v332_v36, %v331_v35 }
 0x24f   : > { %v334_v38 = vadd.f32 %v333_v37, %v530_v15 }
 0x251   : > { %v440_v39 = vmul.f32 -1.442695, %v334_v38 }
 0x253   : > { %456 = vpow2.f32 %v440_v39 }
 0x260   : > { %v457_v40 = vpop.eup %456 }
 0x261   : > { %v338_v41 = vadd.f32 1.0, %v457_v40 }
 0x263   : > { %458 = vrcp.f32 %v338_v41 }
 0x270   : > { %v459_v43 = vpop.eup %458 }
 0x271   : > { %v344_v44 = vrot.slane %v459_v43, %v343_v42 }
 0x273   : > { %346 = vbcast.lane.b32.xlu0 %v344_v44, 256 }
 0x277   : > { %350 = vbcast.lane.b32.xlu0 %v344_v44, 264 }
 0x27b   : > { %354 = vbcast.lane.b32.xlu0 %v344_v44, 272 }
 0x27f   : > { %358 = vbcast.lane.b32.xlu0 %v344_v44, 280 }
 0x2e5   : > { %v347_v45 = vpop.permute.xlu0 %346 }
 0x2e6   : > { %v360_v15 = vmul.f32 %v347_v45, %v504_v2  ;;  %v361_v46 = vmul.f32 %v347_v45, %v508_v4 }
 0x2e8   : > { %368 = vst [vmem:[%s143_s19] sm:$0xff] %v360_v15  ;;  %369 = vst [vmem:[%s143_s19 + $0x8] sm:$0xff] %v361_v46 }
 0x2e9   : > { %v351_v47 = vpop.permute.xlu0 %350 }
 0x2ea   : > { %v362_v13 = vmul.f32 %v351_v47, %v516_v8  ;;  %v363_v48 = vmul.f32 %v351_v47, %v518_v9 }
 0x2ec   : > { %370 = vst [vmem:[%s143_s19 + $0x10] sm:$0xff] %v362_v13  ;;  %371 = vst [vmem:[%s143_s19 + $0x18] sm:$0xff] %v363_v48 }
 0x2ed   : > { %v355_v49 = vpop.permute.xlu0 %354 }
 0x2ee   : > { %v364_v50 = vmul.f32 %v355_v49, %v500_v0  ;;  %v365_v51 = vmul.f32 %v355_v49, %v502_v1 }
 0x2f0   : > { %372 = vst [vmem:[%s143_s19 + $0x20] sm:$0xff] %v364_v50  ;;  %373 = vst [vmem:[%s143_s19 + $0x28] sm:$0xff] %v365_v51 }
 0x2f1   : > { %v359_v52 = vpop.permute.xlu0 %358 }
 0x2f2   : > { %v366_v2 = vmul.f32 %v359_v52, %v510_v5  ;;  %v367_v4 = vmul.f32 %v359_v52, %v512_v6 }
 0x2f4   : > { %374 = vst [vmem:[%s143_s19 + $0x30] sm:$0xff] %v366_v2  ;;  %375 = vst [vmem:[%s143_s19 + $0x38] sm:$0xff] %v367_v4 }
 0x2f5 PF: > { %s12_s9 = sadd.s32 1, %s466_s9  }
 0x2f6   : > { %p9_p4 = scmp.ge.s32.totalorder %s12_s9, 4  }
 0x2f8   :  { %11 = sbr.rel (!%p9_p4) target bundleno = 1 (0x1), region = 58 }

</bundles_post_ra>
